<compile_context>
chip_gen: v6e
topology: v6e:2x2x1
jax: 0.10.0
libtpu: 0.0.40
codegen_flags: <defaults>
</compile_context>

<pallas_src>
import functools

import jax
import jax.numpy as jnp
import numpy as np
from jax import lax
from jax.experimental import pallas as pl
from jax.experimental.pallas import tpu as pltpu


# >= 2 grid steps per TensorCore on v7x (2 TCs/chip); neutral on 1-TC chips.
_MIN_GRID_STEPS = 4


def _fc_attention(avg, mx, w1, w2, *, use_mxu):
    """Shared bottleneck MLP + sigmoid.

    avg, mx: (TN, C) f32.  w1: (Ch, C).  w2: (C, Ch).  Returns (TN, C) f32.
    """
    w1f = w1.astype(jnp.float32)
    w2f = w2.astype(jnp.float32)

    if use_mxu:
        # Large C: use the (otherwise idle) MXU.  Contract the C / Ch axes
        # directly so no transpose is materialized.
        dn = (((1,), (1,)), ((), ()))

        def fc(v):                                                    # (TN, C)
            h = jnp.maximum(
                lax.dot_general(v, w1f, dn,
                                preferred_element_type=jnp.float32), 0.0)
            return lax.dot_general(h, w2f, dn,
                                   preferred_element_type=jnp.float32)
    else:
        # Small C (demo: C=64, Ch=4): exact-f32 broadcast-multiply on the VPU;
        # an MXU matmul would be nearly all padding at these shapes.
        def fc(v):                                                    # (TN, C)
            h = jnp.maximum(
                jnp.sum(w1f[None, :, :] * v[:, None, :], axis=-1), 0.0)
            return jnp.sum(w2f[None, :, :] * h[:, None, :], axis=-1)

    return jax.nn.sigmoid(fc(avg) + fc(mx))


def _ca_fullsample_kernel(x_ref, w1_ref, w2_ref, o_ref, *, use_mxu):
    """Full-sample path.  x_ref/o_ref: (TN, C, HW) blocks (HW = full spatial)."""
    x = x_ref[...]
    hw = x.shape[-1]

    # Global spatial pooling: lane-axis reductions with f32 accumulation.
    avg = jnp.sum(x, axis=-1, dtype=jnp.float32) * (1.0 / hw)          # (TN, C)
    mx = jnp.max(x, axis=-1).astype(jnp.float32)                       # (TN, C)

    att = _fc_attention(avg, mx, w1_ref[...], w2_ref[...], use_mxu=use_mxu)

    # Hot broadcast-multiply stays in the input dtype (only the (TN, C)
    # attention vector is cast; the full block is never copied to f32).
    o_ref[...] = x * att.astype(x.dtype)[:, :, None]


def _ca_hwtiled_kernel(x_ref, w1_ref, w2_ref, o_ref,
                       sum_sc, max_sc, att_sc, *, hw, thw, nh, use_mxu):
    """HW-tiled two-phase path.

    Grid: (batch blocks, 2*nh).  j < nh: accumulate sum/max over HW tiles.
    j == nh: compute attention.  j >= nh: re-stream tiles and apply it.
    x_ref/o_ref blocks: (TN, C, thw).  Scratch: (TN, C) f32 each.
    """
    j = pl.program_id(1)

    @pl.when(j == 0)
    def _():
        sum_sc[...] = jnp.zeros_like(sum_sc)
        max_sc[...] = jnp.full_like(max_sc, -jnp.inf)

    # ---- phase 1: accumulate per-channel sum / max over HW tiles ----
    @pl.when(j < nh)
    def _():
        x = x_ref[...]                                          # (TN, C, thw)
        if hw % thw:
            # Ragged last HW tile: mask out-of-bounds lanes (garbage data).
            col = j * thw + lax.broadcasted_iota(jnp.int32, x.shape, 2)
            valid = col < hw
            xs = jnp.where(valid, x, jnp.zeros((), x.dtype))
            xm = jnp.where(valid, x, jnp.array(-jnp.inf, dtype=x.dtype))
        else:
            xs = x
            xm = x
        sum_sc[...] += jnp.sum(xs, axis=-1, dtype=jnp.float32)
        max_sc[...] = jnp.maximum(max_sc[...],
                                  jnp.max(xm, axis=-1).astype(jnp.float32))

    # ---- transition: tiny bottleneck MLP, once per batch block ----
    @pl.when(j == nh)
    def _():
        avg = sum_sc[...] * (1.0 / hw)
        att_sc[...] = _fc_attention(avg, max_sc[...], w1_ref[...], w2_ref[...],
                                    use_mxu=use_mxu)

    # ---- phase 2: re-stream the HW tiles and apply the attention ----
    @pl.when(j >= nh)
    def _():
        x = x_ref[...]
        o_ref[...] = x * att_sc[...].astype(x.dtype)[:, :, None]


def channel_attention(x, w1, w2, *, block_bytes=8 * 1024 * 1024):
    """x: (N, C, H, W); w1: (C//r, C); w2: (C, C//r).  Returns (N, C, H, W)."""
    N, C, H, W = x.shape
    HW = H * W
    Ch = w1.shape[0]
    assert w1.shape == (Ch, C) and w2.shape == (C, Ch)

    itemsize = x.dtype.itemsize
    per_sample = C * HW * itemsize
    use_mxu = C >= 256
    w_bytes = w1.size * w1.dtype.itemsize + w2.size * w2.dtype.itemsize

    # Lane-dense view: HW on lanes, C on sublanes (free reshape, contiguous).
    # TODO(synk): for HW not a multiple of 128 (7x7, 14x14, ...), fold a
    # channel group into the lane axis so the hot stores are unmasked.
    x3 = x.reshape(N, C, HW)

    def _vmem_limit(block_in, block_out, scratch_bytes=0):
        # 2 pipeline buffers per (input, output) block + resident weights +
        # scratch + headroom; floor at the 32 MiB default, cap under v7x's
        # 64 MiB physical VMEM.
        need = 2 * block_in + 2 * block_out + 2 * w_bytes + scratch_bytes
        return int(min(60 << 20, max(32 << 20, need + (4 << 20))))

    mlp_flops = 4 * N * C * Ch

    use_tiled = (per_sample > block_bytes) and (HW >= 2 * 128)

    if not use_tiled:
        # ---------------- full-sample path ----------------
        # tn capped by (a) the block-byte budget and (b) >= min(N, 4) grid
        # steps so both v7x TensorCores get work.
        tn = max(1, min(N,
                        block_bytes // max(1, per_sample),
                        max(1, N // _MIN_GRID_STEPS)))
        grid_n = pl.cdiv(N, tn)        # ragged last batch block is fine
        blk = tn * per_sample

        cost = pl.CostEstimate(
            flops=3 * N * C * HW + mlp_flops,
            transcendentals=2 * N * C,
            bytes_accessed=2 * N * C * HW * itemsize + w_bytes)

        out3 = pl.pallas_call(
            functools.partial(_ca_fullsample_kernel, use_mxu=use_mxu),
            out_shape=jax.ShapeDtypeStruct((N, C, HW), x.dtype),
            grid_spec=pltpu.PrefetchScalarGridSpec(
                num_scalar_prefetch=0,
                grid=(grid_n,),
                in_specs=[
                    pl.BlockSpec((tn, C, HW), lambda n: (n, 0, 0)),   # x
                    pl.BlockSpec((Ch, C), lambda n: (0, 0)),          # w1
                    pl.BlockSpec((C, Ch), lambda n: (0, 0)),          # w2
                ],
                out_specs=pl.BlockSpec((tn, C, HW), lambda n: (n, 0, 0)),
            ),
            compiler_params=pltpu.CompilerParams(
                dimension_semantics=("parallel",),
                vmem_limit_bytes=_vmem_limit(blk, blk)),
            cost_estimate=cost,
        )(x3, w1, w2)
        return out3.reshape(N, C, H, W)

    # ---------------- HW-tiled two-phase path ----------------
    tn = 1                                        # one (big) sample per block
    thw = (block_bytes // (tn * C * itemsize)) // 128 * 128
    thw = int(max(128, min(thw, (HW // 128) * 128)))
    nh = pl.cdiv(HW, thw)                         # HW tiles (last may be ragged)
    grid = (pl.cdiv(N, tn), 2 * nh)
    blk = tn * C * thw * itemsize
    scratch_bytes = 3 * tn * C * 4

    cost = pl.CostEstimate(
        flops=3 * N * C * HW + mlp_flops,
        transcendentals=2 * N * C,
        bytes_accessed=3 * N * C * HW * itemsize + w_bytes)   # 2 reads + 1 write

    out3 = pl.pallas_call(
        functools.partial(_ca_hwtiled_kernel, hw=HW, thw=thw, nh=nh,
                          use_mxu=use_mxu),
        out_shape=jax.ShapeDtypeStruct((N, C, HW), x.dtype),
        grid_spec=pltpu.PrefetchScalarGridSpec(
            num_scalar_prefetch=0,
            grid=grid,
            in_specs=[
                # x tile: phase 1 walks tiles 0..nh-1, phase 2 walks them again.
                pl.BlockSpec((tn, C, thw), lambda n, j: (n, 0, j % nh)),
                pl.BlockSpec((Ch, C), lambda n, j: (0, 0)),
                pl.BlockSpec((C, Ch), lambda n, j: (0, 0)),
            ],
            # Output stays parked on tile 0 through phase 1 (never written, so
            # nothing is flushed), then advances with phase 2's writes.
            out_specs=pl.BlockSpec((tn, C, thw),
                                   lambda n, j: (n, 0, jnp.maximum(j - nh, 0))),
            scratch_shapes=[
                pltpu.VMEM((tn, C), jnp.float32),   # running sum
                pltpu.VMEM((tn, C), jnp.float32),   # running max
                pltpu.VMEM((tn, C), jnp.float32),   # attention weights
            ],
        ),
        compiler_params=pltpu.CompilerParams(
            dimension_semantics=("parallel", "arbitrary"),
            vmem_limit_bytes=_vmem_limit(blk, blk, scratch_bytes)),
        cost_estimate=cost,
    )(x3, w1, w2)
    return out3.reshape(N, C, H, W)


def _reference(x, w1, w2):
    """Pure-JAX mirror of the PyTorch ChannelAttention forward."""
    hi = jax.lax.Precision.HIGHEST
    avg = jnp.mean(x, axis=(2, 3), keepdims=True)                # (N,C,1,1)
    mx = jnp.max(x, axis=(2, 3), keepdims=True)                  # (N,C,1,1)

    def fc(v):  # two 1x1 convs (no bias) with ReLU in between
        h = jnp.maximum(jnp.einsum('nchw,oc->nohw', v, w1, precision=hi), 0.0)
        return jnp.einsum('nchw,oc->nohw', h, w2, precision=hi)

    att = jax.nn.sigmoid(fc(avg) + fc(mx))                       # (N,C,1,1)
    return x * att


if __name__ == "__main__":
    key = jax.random.PRNGKey(0)
    k_x, k_w1, k_w2, k_x2, k_x3 = jax.random.split(key, 5)

    # Demo shape: matches ChannelAttention(in_channels=64, reduction_ratio=16).
    N, C, H, W = 2, 64, 16, 16
    reduction_ratio = 16
    Ch = C // reduction_ratio                                    # 4

    x = jax.random.normal(k_x, (N, C, H, W), dtype=jnp.float32)

    # Conv2d(C, Ch, 1, bias=False) / Conv2d(Ch, C, 1, bias=False) weights,
    # kaiming-uniform-like bounds (deterministic, synthetic).
    b1 = 1.0 / np.sqrt(C)
    w1 = jax.random.uniform(k_w1, (Ch, C), minval=-b1, maxval=b1,
                            dtype=jnp.float32)
    b2 = 1.0 / np.sqrt(Ch)
    w2 = jax.random.uniform(k_w2, (C, Ch), minval=-b2, maxval=b2,
                            dtype=jnp.float32)

    # 1) Full-sample path (grid of 2 batch steps -> both v7x TCs busy).
    out = jax.block_until_ready(channel_attention(x, w1, w2))
    ref = jax.block_until_ready(_reference(x, w1, w2))
    np.testing.assert_allclose(np.asarray(out), np.asarray(ref),
                               rtol=1e-5, atol=1e-5)

    # 2) HW-tiled two-phase path, forced via a tiny block budget; 18*18 = 324
    #    exercises a ragged (masked) last HW tile.
    xb = jax.random.normal(k_x2, (2, C, 18, 18), dtype=jnp.float32)
    out_t = jax.block_until_ready(
        channel_attention(xb, w1, w2, block_bytes=32 * 1024))
    ref_t = jax.block_until_ready(_reference(xb, w1, w2))
    np.testing.assert_allclose(np.asarray(out_t), np.asarray(ref_t),
                               rtol=1e-5, atol=1e-5)

    # 3) Ragged cdiv batch grid (N=9, tn=2 -> 5 blocks, last one padded).
    xc = jax.random.normal(k_x3, (9, C, 8, 8), dtype=jnp.float32)
    out_r = jax.block_until_ready(channel_attention(xc, w1, w2))
    ref_r = jax.block_until_ready(_reference(xc, w1, w2))
    np.testing.assert_allclose(np.asarray(out_r), np.asarray(ref_r),
                               rtol=1e-5, atol=1e-5)

    print("KERNEL_OK")
</pallas_src>

<mosaic_0001>
module attributes {stable_mosaic.version = 11 : i64} {
  func.func @_ca_fullsample_kernel(%arg0: i32, %arg1: memref<1x64x256xf32, #tpu.memory_space<vmem>>, %arg2: memref<4x64xf32, #tpu.memory_space<vmem>>, %arg3: memref<64x4xf32, #tpu.memory_space<vmem>>, %arg4: memref<1x64x256xf32, #tpu.memory_space<vmem>>) attributes {dimension_semantics = [#tpu.dimension_semantics<parallel>], iteration_bounds = array<i64: 2>, scalar_prefetch = 0 : i64, scratch_operands = 0 : i64, tpu.core_type = #tpu.core_type<tc>, window_params = [{transform_indices = @transform_0, window_bounds = array<i64: 1, 64, 256>}, {pipeline_mode = #tpu.pipeline_mode<synchronous>, transform_indices = @transform_1, window_bounds = array<i64: 4, 64>}, {pipeline_mode = #tpu.pipeline_mode<synchronous>, transform_indices = @transform_2, window_bounds = array<i64: 64, 4>}, {transform_indices = @transform_3, window_bounds = array<i64: 1, 64, 256>}]} {
    %c0 = arith.constant 0 : index
    %c0_0 = arith.constant 0 : index
    %c0_1 = arith.constant 0 : index
    %0 = vector.load %arg1[%c0, %c0_0, %c0_1] : memref<1x64x256xf32, #tpu.memory_space<vmem>>, vector<1x64x256xf32>
    %cst = arith.constant dense<0.000000e+00> : vector<1x64xf32>
    %1 = vector.multi_reduction <add>, %0, %cst [2] : vector<1x64x256xf32> to vector<1x64xf32>
    %cst_2 = arith.constant 3.906250e-03 : f32
    %2 = vector.broadcast %cst_2 : f32 to vector<1x64xf32>
    %3 = arith.mulf %1, %2 : vector<1x64xf32>
    %cst_3 = arith.constant dense<0xFF800000> : vector<1x64xf32>
    %4 = vector.multi_reduction <maximumf>, %0, %cst_3 [2] : vector<1x64x256xf32> to vector<1x64xf32>
    %c0_4 = arith.constant 0 : index
    %c0_5 = arith.constant 0 : index
    %5 = vector.load %arg2[%c0_4, %c0_5] : memref<4x64xf32, #tpu.memory_space<vmem>>, vector<4x64xf32>
    %c0_6 = arith.constant 0 : index
    %c0_7 = arith.constant 0 : index
    %6 = vector.load %arg3[%c0_6, %c0_7] : memref<64x4xf32, #tpu.memory_space<vmem>>, vector<64x4xf32>
    %7 = vector.shape_cast %5 : vector<4x64xf32> to vector<1x4x64xf32>
    %8 = vector.shape_cast %3 : vector<1x64xf32> to vector<1x1x64xf32>
    %9 = vector.broadcast %8 : vector<1x1x64xf32> to vector<1x4x64xf32>
    %10 = arith.mulf %7, %9 : vector<1x4x64xf32>
    %cst_8 = arith.constant dense<0.000000e+00> : vector<1x4xf32>
    %11 = vector.multi_reduction <add>, %10, %cst_8 [2] : vector<1x4x64xf32> to vector<1x4xf32>
    %cst_9 = arith.constant 0.000000e+00 : f32
    %12 = vector.broadcast %cst_9 : f32 to vector<1x4xf32>
    %13 = arith.maximumf %11, %12 : vector<1x4xf32>
    %14 = vector.shape_cast %6 : vector<64x4xf32> to vector<1x64x4xf32>
    %15 = vector.shape_cast %13 : vector<1x4xf32> to vector<1x1x4xf32>
    %16 = vector.broadcast %15 : vector<1x1x4xf32> to vector<1x64x4xf32>
    %17 = arith.mulf %14, %16 : vector<1x64x4xf32>
    %cst_10 = arith.constant dense<0.000000e+00> : vector<1x64xf32>
    %18 = vector.multi_reduction <add>, %17, %cst_10 [2] : vector<1x64x4xf32> to vector<1x64xf32>
    %19 = vector.shape_cast %5 : vector<4x64xf32> to vector<1x4x64xf32>
    %20 = vector.shape_cast %4 : vector<1x64xf32> to vector<1x1x64xf32>
    %21 = vector.broadcast %20 : vector<1x1x64xf32> to vector<1x4x64xf32>
    %22 = arith.mulf %19, %21 : vector<1x4x64xf32>
    %cst_11 = arith.constant dense<0.000000e+00> : vector<1x4xf32>
    %23 = vector.multi_reduction <add>, %22, %cst_11 [2] : vector<1x4x64xf32> to vector<1x4xf32>
    %cst_12 = arith.constant 0.000000e+00 : f32
    %24 = vector.broadcast %cst_12 : f32 to vector<1x4xf32>
    %25 = arith.maximumf %23, %24 : vector<1x4xf32>
    %26 = vector.shape_cast %6 : vector<64x4xf32> to vector<1x64x4xf32>
    %27 = vector.shape_cast %25 : vector<1x4xf32> to vector<1x1x4xf32>
    %28 = vector.broadcast %27 : vector<1x1x4xf32> to vector<1x64x4xf32>
    %29 = arith.mulf %26, %28 : vector<1x64x4xf32>
    %cst_13 = arith.constant dense<0.000000e+00> : vector<1x64xf32>
    %30 = vector.multi_reduction <add>, %29, %cst_13 [2] : vector<1x64x4xf32> to vector<1x64xf32>
    %31 = arith.addf %18, %30 : vector<1x64xf32>
    %32 = arith.negf %31 : vector<1x64xf32>
    %33 = math.exp %32 : vector<1x64xf32>
    %cst_14 = arith.constant 1.000000e+00 : f32
    %34 = vector.broadcast %cst_14 : f32 to vector<1x64xf32>
    %35 = arith.addf %34, %33 : vector<1x64xf32>
    %36 = arith.divf %34, %35 : vector<1x64xf32>
    %37 = vector.shape_cast %36 : vector<1x64xf32> to vector<1x64x1xf32>
    %38 = vector.broadcast %37 : vector<1x64x1xf32> to vector<1x64x256xf32>
    %39 = arith.mulf %0, %38 : vector<1x64x256xf32>
    %c0_15 = arith.constant 0 : index
    %c0_16 = arith.constant 0 : index
    %c0_17 = arith.constant 0 : index
    %40 = vector.load %arg4[%c0_15, %c0_16, %c0_17] : memref<1x64x256xf32, #tpu.memory_space<vmem>>, vector<1x64x256xf32>
    tpu.vector_store %arg4[%c0_15, %c0_16, %c0_17], %39 {strides = array<i32>} : memref<1x64x256xf32, #tpu.memory_space<vmem>>, vector<1x64x256xf32>,
    return
  }
  func.func @transform_0(%arg0: i32) -> (i32, i32, i32) {
    %c0_i32 = arith.constant 0 : i32
    %c0_i32_0 = arith.constant 0 : i32
    %c0_i32_1 = arith.constant 0 : i32
    return %arg0, %c0_i32, %c0_i32_0 : i32, i32, i32
  }
  func.func @transform_1(%arg0: i32) -> (i32, i32) {
    %c0_i32 = arith.constant 0 : i32
    %c0_i32_0 = arith.constant 0 : i32
    %c0_i32_1 = arith.constant 0 : i32
    return %c0_i32, %c0_i32_0 : i32, i32
  }
  func.func @transform_2(%arg0: i32) -> (i32, i32) {
    %c0_i32 = arith.constant 0 : i32
    %c0_i32_0 = arith.constant 0 : i32
    %c0_i32_1 = arith.constant 0 : i32
    return %c0_i32, %c0_i32_0 : i32, i32
  }
  func.func @transform_3(%arg0: i32) -> (i32, i32, i32) {
    %c0_i32 = arith.constant 0 : i32
    %c0_i32_0 = arith.constant 0 : i32
    %c0_i32_1 = arith.constant 0 : i32
    return %arg0, %c0_i32, %c0_i32_0 : i32, i32, i32
  }
}

</mosaic_0001>

<bundles_post_ra>
// kernel: tpu_custom_call.1
= control target key start
LH: loop header
LB: loop body
LE: loop exit
PB: predicated region body
PF: predicated region fallthrough
CT: control target
= control target key end

     0   :  { %8 = vsyncpa [#allocation3], 0  ;;  %s1231_s0 = inlined_call_operand.hbm [shape: f32[2,64,256], index: 0, kind: input, shape index: {}]   ;;  %s1232_s1 = inlined_call_operand.vmem [shape: f32[4,64], index: 1, kind: input, shape index: {}]   ;;  %s1233_s2 = inlined_call_operand.vmem [shape: f32[64,4], index: 2, kind: input, shape index: {}]   ;;  %s1234_s3 = inlined_call_operand.hbm [shape: f32[2,64,256], index: 3, kind: output, shape index: {}]  }
   0x1   :  { %10 = vsyncpa [#allocation3 + $0x1], 0 }
   0x2   :  { %11 = vsyncpa [#allocation4], 0 }
   0x3   :  { %13 = vsyncpa [#allocation4 + $0x1], 0  ;;  %s893_s12 = smov 0   ;;  %s895_s13 = smov 0  }
   0x4   :  { %s897_s14 = smov 0   ;;  %s899_s15 = smov 0  }
   0x5 LB: > { %s914_s16 = sadd.s32 4294967295, %s865_s15   ;;  %s667_s17 = sadd.s32 4294967294, %s865_s15   ;;  %s865_s15 = sphi %s899_s15, %s1249_s15   ;;  %s861_s14 = sphi %s897_s14, %s1248_s14   ;;  %s857_s13 = sphi %s895_s13, %s1247_s13   ;;  %s853_s12 = sphi %s893_s12, %s1246_s12  }
   0x6   : > { %s918_s18 = sadd.s32 1, %s865_s15   ;;  %s26_s19 = sadd.s32 1, %s861_s14 }
   0x7   : > { %s23_s20 = ssub.s32 %s865_s15, %s918_s18  ;;  %p33_p0 = scmp.ne.s32.totalorder %s861_s14, %s857_s13 }
   0x8   : > { %p24_p1 = scmp.eq.s32.totalorder %s23_s20, 0  ;;  %p34_p2 = scmp.eq.s32.totalorder %s865_s15, 0 }
   0x9   : > { %p39_p3 = scmp.ne.s32.totalorder %s857_s13, %s853_s12  ;;  %p40_p4 = scmp.eq.s32.totalorder %s914_s16, 0 }
   0xa   : > { %s930_s21 = scalar_select %p24_p1, %s861_s14, %s26_s19  }
   0xb   : > { %p932_p5 = por %p34_p2, %p33_p0  ;;  %p936_p6 = por %p40_p4, %p39_p3 }
   0xc   : > { %p105_p7 = scmp.eq.s32.totalorder %s914_s16, 1  ;;  %p111_p8 = scmp.eq.s32.totalorder %s667_s17, 1 }
   0xd   : > { %s1238_s23 = scalar_select %p936_p6, 1, 0 }
   0xe   : > { %p703_p10 = scmp.lt.s32.totalorder %s865_s15, 2  ;;  %p943_p11 = por %p105_p7, %p33_p0 }
   0xf   : > { %p947_p12 = por %p111_p8, %p39_p3  ;;  %s137_s26 = sand.u32 1, %s861_s14  }
  0x10   : > { %s1239_s24 = scalar_select %p943_p11, 1, 0 }
  0x11   : > { %s1240_s25 = scalar_select %p947_p12, 1, 0 }
  0x12   : > { %s689_s27 = sshll.u32 %s865_s15, 11  ;;  %s670_s28 = sshll.u32 %s137_s26, 7 }
  0x13   : > { %s956_s4 = scalar_lea.hbm %s1231_s0, %s689_s27  ;;  %s141_s5 = scalar_lea.vmem [#allocation2], %s670_s28 }
  0x14   : > { %s148_s6 = sshll.u32 %s141_s5, 4  ;;  %p960_p13 = pnand %p703_p10, %p932_p5  ;;  %s964_s6 = int_to_ptr.vmem [resolvable:$true] %s148_s6 }
  0x15   : > { %s966_s8 = scalar_lea.sflag [#allocation3], %s137_s26  ;;  %s773_s9 = scalar_lea.hbm %s956_s4, 2048 }
  0x16   : > { %p774_p0 = scmp.ne.s32.totalorder %s956_s4, %s773_s9  ;;  %p775_p1 = pneg %p960_p13 }
  0x17   : > { %s778_s17 = scalar_lea.hbm %s1231_s0, 4096  ;;  %p779_p4 = scmp.lt.s32.totalorder %s956_s4, %s1231_s0 }
  0x18   : > { %p776_p2 = pnand %p775_p1, %p774_p0  ;;  %p780_p5 = scmp.lt.s32.totalorder %s778_s17, %s773_s9 }
  0x1a   : > { %p777_p3 = pneg %p776_p2  ;;  %p781_p7 = por %p780_p5, %p779_p4 }
  0x1c   : > { %p782_p8 = pnand %p781_p7, %p777_p3 }
  0x1e   : > { %785 = shalt.err (!%p782_p8)
}
  0x1f   : > { %s786_s22 = scalar_lea.vmem %s964_s6, 2048  ;;  %s867_s26 = smov [#allocation2]  }
  0x20   : > { %p787_p10 = scmp.ne.s32.totalorder %s964_s6, %s786_s22  ;;  %s791_s27 = sshll.u32 %s867_s26, 4  ;;  %s792_s27 = int_to_ptr.vmem [resolvable:$false] %s791_s27 }
  0x21   : > { %s793_s28 = scalar_lea.vmem %s792_s27, 4096  ;;  %p794_p2 = scmp.lt.s32.totalorder %s964_s6, %s792_s27 }
  0x22   : > { %p789_p9 = pnand %p787_p10, %p775_p1  ;;  %p795_p12 = scmp.lt.s32.totalorder %s793_s28, %s786_s22 }
  0x24   : > { %p790_p0 = pneg %p789_p9  ;;  %p796_p11 = por %p795_p12, %p794_p2 }
  0x26   : > { %p797_p6 = pnand %p796_p11, %p790_p0 }
  0x28   : > { %800 = shalt.err (!%p797_p6)
}
  0x29   : > { %s868_s29 = smov 256   ;;  %s869_s30 = smov 16  }
  0x2a   : > { %698 = dma.hbm_to_vmem [thread:$0]  (!%p960_p13), %s956_s4, 2048, %s964_s6, %s966_s8, %s868_s29, %s868_s29, %s869_s30  }
  0x2b   : > { %p673_p9 = scmp.ge.s32.totalorder %s865_s15, 1  ;;  %p156_p1 = scmp.lt.s32.totalorder %s865_s15, 3 }
  0x2d   : > { %p157_p3 = pnand %p673_p9, %p156_p1 }
  0x2e   : > { %s990_s5 = sand.u32 (!%p157_p3), 1, %s857_s13   ;;  %p1242_p6 = scmp.ne.s32.totalorder (!%p157_p3), %s1238_s23, 0 }
  0x2f   : > { %160 = sbr.rel (%p157_p3) target bundleno = 594 (0x252), region = 32  ;;  %s674_s9 = sshll.u32 (!%p157_p3), %s990_s5, 7 }
  0x30   : > { %s163_s10 = scalar_lea.sflag (!%p157_p3), [#allocation3], %s990_s5  ;;  %s996_s11 = scalar_lea.vmem (!%p157_p3), [#allocation2], %s674_s9 }
  0x34   : > { %844 = dma.done.wait (%p1242_p6), %s163_s10, 2048  }
  0x35   : > { %846 = vsyncadd (%p1242_p6), %s163_s10, 4294965248  ;;  %v1003_v0 = vld [vmem:[%s996_s11 + $0x20] sm:$0xff]  ;;  %v1006_v1 = vld [vmem:[%s996_s11 + $0x28] sm:$0xff]  ;;  %v278_v34 = vlaneseq  ;;  %vm289_vm0 = vcmask 130112   ;;  %vm296_vm1 = vcmask 195712   ;;  %vm303_vm2 = vcmask 261312  }
  0x36   : > { %v1009_v2 = vld [vmem:[%s996_s11] sm:$0xff]  ;;  %v211_v3 = vadd.f32 %v1006_v1, %v1003_v0  ;;  %v1014_v4 = vld [vmem:[%s996_s11 + $0x8] sm:$0xff]  ;;  %v1017_v5 = vld [vmem:[%s996_s11 + $0x30] sm:$0xff]  ;;  %v243_v16 = vmax.f32 %v1003_v0, %v1006_v1  ;;  %vm310_vm3 = vcmask 326912   ;;  %vm317_vm4 = vcmask 392512   ;;  %s1151_s6 = scalar_lea.vmem [#allocation5], %s674_s9 }
  0x37   : > { %v1020_v6 = vld [vmem:[%s996_s11 + $0x38] sm:$0xff]  ;;  %v205_v7 = vadd.f32 %v1014_v4, %v1009_v2  ;;  %v1025_v8 = vld [vmem:[%s996_s11 + $0x10] sm:$0xff]  ;;  %v237_v13 = vmax.f32 %v1009_v2, %v1014_v4  ;;  %v1039_v14 = vld [vmem:[%s996_s11 + $0x40] sm:$0xff]  ;;  %v279_v37 = vand.u32 127, %v278_v34  ;;  %v281_v41 = vshrl.u32 %v278_v34, 7  ;;  %s690_s9 = sshll.u32 %s914_s16, 11 }
  0x38   : > { %v1028_v9 = vld [vmem:[%s996_s11 + $0x18] sm:$0xff]  ;;  %212 = vadd.xlane.f32.xlu1 %v211_v3  ;;  %v214_v10 = vadd.f32 %v1020_v6, %v1017_v5  ;;  %v1042_v15 = vld [vmem:[%s996_s11 + $0x48] sm:$0xff]  ;;  %v1049_v18 = vld [vmem:[%s996_s11 + $0x50] sm:$0xff]  ;;  %v246_v20 = vmax.f32 %v1017_v5, %v1020_v6  ;;  %vm324_vm5 = vcmask 458112   ;;  %vm331_vm6 = vcmask 523712   ;;  %s594_s7 = sshll.u32 %s1151_s6, 4  ;;  %s1180_s19 = scalar_lea.hbm %s1234_s3, %s690_s9  ;;  %s1182_s7 = int_to_ptr.vmem [resolvable:$true] %s594_s7 }
  0x39   : > { %206 = vadd.xlane.f32.xlu0 %v205_v7  ;;  %v208_v11 = vadd.f32 %v1028_v9, %v1025_v8  ;;  %v240_v12 = vmax.f32 %v1025_v8, %v1028_v9  ;;  %v217_v17 = vadd.f32 %v1042_v15, %v1039_v14  ;;  %v1052_v19 = vld [vmem:[%s996_s11 + $0x58] sm:$0xff]  ;;  %v1059_v22 = vld [vmem:[%s996_s11 + $0x60] sm:$0xff]  ;;  %v1062_v23 = vld [vmem:[%s996_s11 + $0x68] sm:$0xff]  ;;  %v249_v24 = vmax.f32 %v1039_v14, %v1042_v15  ;;  %s581_s16 = scalar_lea.sflag [#allocation4], %s990_s5  ;;  %s801_s20 = scalar_lea.vmem %s1182_s7, 2048 }
  0x3a   : > { %v220_v21 = vadd.f32 %v1052_v19, %v1049_v18  ;;  %v223_v25 = vadd.f32 %v1062_v23, %v1059_v22  ;;  %v1069_v26 = vld [vmem:[%s996_s11 + $0x70] sm:$0xff]  ;;  %v1072_v27 = vld [vmem:[%s996_s11 + $0x78] sm:$0xff]  ;;  %v252_v28 = vmax.f32 %v1049_v18, %v1052_v19  ;;  %v255_v31 = vmax.f32 %v1059_v22, %v1062_v23  ;;  %p802_p11 = scmp.ne.s32.totalorder %s1182_s7, %s801_s20  ;;  %p1243_p12 = scmp.ne.s32.totalorder %s1239_s24, 0 }
  0x3b   : > { %v226_v29 = vadd.f32 %v1072_v27, %v1069_v26  ;;  %v258_v30 = vmax.f32 %v1069_v26, %v1072_v27  ;;  %v284_v38 = vadd.s32 4294967288, %v279_v37  ;;  %v291_v45 = vadd.s32 4294967280, %v279_v37  ;;  %s870_s22 = smov [#allocation5]  }
  0x3c   : > { %215 = vadd.xlane.f32.xlu1 %v214_v10  ;;  %v1082_v47 = vsub.s32 %v279_v37, %v281_v41  ;;  %v298_v49 = vadd.s32 4294967272, %v279_v37  ;;  %v305_v50 = vadd.s32 4294967264, %v279_v37  ;;  %v312_v53 = vadd.s32 4294967256, %v279_v37  ;;  %p803_p13 = pnand %p802_p11, %p1243_p12  ;;  %s805_s26 = sshll.u32 %s870_s22, 4  ;;  %s806_s26 = int_to_ptr.vmem [resolvable:$false] %s805_s26 }
  0x3d   : > { %209 = vadd.xlane.f32.xlu0 %v208_v11  ;;  %v287_v42 = vsub.s32 %v284_v38, %v281_v41  ;;  %v294_v54 = vsub.s32 %v291_v45, %v281_v41  ;;  %v319_v57 = vadd.s32 4294967248, %v279_v37  ;;  %v326_v11 = vadd.s32 4294967240, %v279_v37  ;;  %s807_s27 = scalar_lea.vmem %s806_s26, 4096  ;;  %p808_p5 = scmp.lt.s32.totalorder %s1182_s7, %s806_s26 }
  0x3e   : > { %v301_v59 = vsub.s32 %v298_v49, %v281_v41  ;;  %v308_v61 = vsub.s32 %v305_v50, %v281_v41  ;;  %v315_v3 = vsub.s32 %v312_v53, %v281_v41  ;;  %vm339_vm7 = vcmask 519168   ;;  %p804_p4 = pneg %p803_p13  ;;  %p809_p7 = scmp.lt.s32.totalorder %s807_s27, %s801_s20 }
  0x3f   : > { %vm368_vm8 = vcmask 31744  }
  0x40   : > { %241 = vmax.xlane.f32.xlu1 %v240_v12  ;;  %p810_p8 = por %p809_p7, %p808_p5 }
  0x41   : > { %238 = vmax.xlane.f32.xlu0 %v237_v13  ;;  %v322_v13 = vsub.s32 %v319_v57, %v281_v41 }
  0x42   : > { %p811_p10 = pnand %p810_p8, %p804_p4 }
  0x44   : > { %244 = vmax.xlane.f32.xlu1 %v243_v16 }
  0x45   : > { %218 = vadd.xlane.f32.xlu0 %v217_v17 }
  0x48   : > { %247 = vmax.xlane.f32.xlu1 %v246_v20 }
  0x49   : > { %221 = vadd.xlane.f32.xlu0 %v220_v21 }
  0x4c   : > { %250 = vmax.xlane.f32.xlu1 %v249_v24 }
  0x4d   : > { %224 = vadd.xlane.f32.xlu0 %v223_v25 }
  0x50   : > { %253 = vmax.xlane.f32.xlu1 %v252_v28 }
  0x51   : > { %227 = vadd.xlane.f32.xlu0 %v226_v29 }
  0x54   : > { %259 = vmax.xlane.f32.xlu1 %v258_v30 }
  0x55   : > { %256 = vmax.xlane.f32.xlu0 %v255_v31 }
  0xc1   : > { %v213_v32 = vpop.xlane.xlu1 %212 }
  0xc2   : > { %v207_v33 = vpop.xlane.xlu0 %206  ;;  %v231_v55 = vmul.f32 0.00390625, %v213_v32  ;;  %v329_v32 = vsub.s32 %v326_v11, %v281_v41  ;;  %v262_v11 = vld [vmem:[%s1233_s2] sm:$0xff] }
  0xc3   : > { %v229_v48 = vmul.f32 0.00390625, %v207_v33 }
  0xc4   : > { %v295_v12 = vrot.slane %v231_v55, %v294_v54 }
  0xc5   : > { %v216_v35 = vpop.xlane.xlu1 %215  ;;  %v283_v58 = vrot.slane %v229_v48, %v1082_v47 }
  0xc6   : > { %v210_v36 = vpop.xlane.xlu0 %209  ;;  %v232_v60 = vmul.f32 0.00390625, %v216_v35 }
  0xc7   : > { %v230_v43 = vmul.f32 0.00390625, %v210_v36 }
  0xc8   : > { %v302_v17 = vrot.slane %v232_v60, %v301_v59 }
  0xc9   : > { %v242_v39 = vpop.xlane.xlu1 %241  ;;  %v288_v51 = vrot.slane %v230_v43, %v287_v42 }
  0xca   : > { %v239_v40 = vpop.xlane.xlu0 %238  ;;  %v408_v21 = vrot.slane %v242_v39, %v287_v42 }
  0xcb   : > { %v290_v63 = vsel %vm289_vm0, %v288_v51, %v283_v58  ;;  %v404_v24 = vrot.slane %v239_v40, %v1082_v47 }
  0xcc   : > { %v297_v25 = vsel %vm296_vm1, %v295_v12, %v290_v63 }
  0xcd   : > { %v245_v44 = vpop.xlane.xlu1 %244  ;;  %v304_v36 = vsel %vm303_vm2, %v302_v17, %v297_v25  ;;  %v409_v39 = vsel %vm289_vm0, %v408_v21, %v404_v24  ;;  %v265_v17 = vld [vmem:[%s1233_s2 + $0x18] sm:$0xff] }
  0xce   : > { %v219_v46 = vpop.xlane.xlu0 %218  ;;  %v413_v29 = vrot.slane %v245_v44, %v294_v54 }
  0xcf   : > { %v233_v62 = vmul.f32 0.00390625, %v219_v46  ;;  %v261_v46 = vld [vmem:[%s1232_s1] sm:$0xf] }
  0xd0   : > { %v414_v43 = vsel %vm296_vm1, %v413_v29, %v409_v39 }
  0xd1   : > { %v248_v52 = vpop.xlane.xlu1 %247  ;;  %v309_v28 = vrot.slane %v233_v62, %v308_v61 }
  0xd2   : > { %v222_v56 = vpop.xlane.xlu0 %221  ;;  %v418_v33 = vrot.slane %v248_v52, %v301_v59 }
  0xd3   : > { %v234_v7 = vmul.f32 0.00390625, %v222_v56  ;;  %v311_v40 = vsel %vm310_vm3, %v309_v28, %v304_v36 }
  0xd4   : > { %v419_v48 = vsel %vm303_vm2, %v418_v33, %v414_v43 }
  0xd5   : > { %v251_v10 = vpop.xlane.xlu1 %250  ;;  %v316_v30 = vrot.slane %v234_v7, %v315_v3 }
  0xd6   : > { %v225_v16 = vpop.xlane.xlu0 %224  ;;  %v423_v37 = vrot.slane %v251_v10, %v308_v61  ;;  %v263_v10 = vld [vmem:[%s1233_s2 + $0x8] sm:$0xff] }
  0xd7   : > { %v235_v20 = vmul.f32 0.00390625, %v225_v16  ;;  %v318_v44 = vsel %vm317_vm4, %v316_v30, %v311_v40  ;;  %v267_v30 = vld [vmem:[%s1233_s2 + $0x28] sm:$0xff] }
  0xd8   : > { %v424_v52 = vsel %vm310_vm3, %v423_v37, %v419_v48  ;;  %v269_v48 = vld [vmem:[%s1233_s2 + $0x38] sm:$0xff] }
  0xd9   : > { %v254_v31 = vpop.xlane.xlu1 %253  ;;  %v323_v34 = vrot.slane %v235_v20, %v322_v13  ;;  %v264_v20 = vld [vmem:[%s1233_s2 + $0x10] sm:$0xff] }
  0xda   : > { %v228_v35 = vpop.xlane.xlu0 %227  ;;  %v428_v42 = vrot.slane %v254_v31, %v315_v3  ;;  %v266_v31 = vld [vmem:[%s1233_s2 + $0x20] sm:$0xff] }
  0xdb   : > { %v236_v38 = vmul.f32 0.00390625, %v228_v35  ;;  %v325_v51 = vsel %vm324_vm5, %v323_v34, %v318_v44 }
  0xdc   : > { %v429_v55 = vsel %vm317_vm4, %v428_v42, %v424_v52 }
  0xdd   : > { %v330_v41 = vrot.slane %v236_v38, %v329_v32  ;;  %v260_v45 = vpop.xlane.xlu1 %259 }
  0xde   : > { %v257_v49 = vpop.xlane.xlu0 %256  ;;  %v438_v50 = vrot.slane %v260_v45, %v329_v32 }
  0xdf   : > { %v433_v53 = vrot.slane %v257_v49, %v322_v13  ;;  %v332_v54 = vsel %vm331_vm6, %v330_v41, %v325_v51  ;;  %v268_v49 = vld [vmem:[%s1233_s2 + $0x30] sm:$0xff] }
  0xe0   : > { %v338_v56 = vmul.f32 %v332_v54, %v261_v46 }
  0xe1   : > { %v434_v57 = vsel %vm324_vm5, %v433_v53, %v429_v55 }
  0xe2   : > { %v340_v58 = vsel %vm339_vm7, %v338_v56, 0.0  ;;  %v439_v59 = vsel %vm331_vm6, %v438_v50, %v434_v57 }
  0xe3   : > { %341 = vadd.xlane.f32.xlu0 %v340_v58  ;;  %v443_v60 = vmul.f32 %v439_v59, %v261_v46 }
  0xe5   : > { %v444_v61 = vsel %vm339_vm7, %v443_v60, 0.0 }
  0xe6   : > { %445 = vadd.xlane.f32.xlu1 %v444_v61 }
 0x16c   : > { %v342_v3 = vpop.xlane.xlu0 %341 }
 0x16d   : > { %v343_v16 = vmax.f32 %v342_v3, 0.0 }
 0x16f   : > { %v446_v62 = vpop.xlane.xlu1 %445  ;;  %v348_v29 = vrot.slane %v343_v16, %v1082_v47 }
 0x170   : > { %v447_v63 = vmax.f32 %v446_v62, 0.0 }
 0x171   : > { %v361_v37 = vmul.f32 %v348_v29, %v263_v10  ;;  %v360_v38 = vmul.f32 %v348_v29, %v262_v11  ;;  %v363_v42 = vmul.f32 %v348_v29, %v265_v17  ;;  %v362_v43 = vmul.f32 %v348_v29, %v264_v20 }
 0x172   : > { %v452_v7 = vrot.slane %v447_v63, %v1082_v47  ;;  %v365_v45 = vmul.f32 %v348_v29, %v267_v30  ;;  %v364_v46 = vmul.f32 %v348_v29, %v266_v31  ;;  %v367_v52 = vmul.f32 %v348_v29, %v269_v48 }
 0x173   : > { %v372_v39 = vsel %vm368_vm8, %v361_v37, 0.0  ;;  %v369_v40 = vsel %vm368_vm8, %v360_v38, 0.0  ;;  %v378_v44 = vsel %vm368_vm8, %v363_v42, 0.0  ;;  %v375_v41 = vsel %vm368_vm8, %v362_v43, 0.0 }
 0x174   : > { %v461_v12 = vmul.f32 %v452_v7, %v263_v10  ;;  %v460_v13 = vmul.f32 %v452_v7, %v262_v11  ;;  %v463_v25 = vmul.f32 %v452_v7, %v265_v17  ;;  %v462_v28 = vmul.f32 %v452_v7, %v264_v20 }
 0x175   : > { %v465_v34 = vmul.f32 %v452_v7, %v267_v30  ;;  %v464_v35 = vmul.f32 %v452_v7, %v266_v31  ;;  %v384_v50 = vsel %vm368_vm8, %v365_v45, 0.0  ;;  %v381_v51 = vsel %vm368_vm8, %v364_v46, 0.0 }
 0x176   : > { %v471_v21 = vsel %vm368_vm8, %v461_v12, 0.0  ;;  %v468_v24 = vsel %vm368_vm8, %v460_v13, 0.0  ;;  %v477_v32 = vsel %vm368_vm8, %v463_v25, 0.0  ;;  %v474_v33 = vsel %vm368_vm8, %v462_v28, 0.0 }
 0x177   : > { %472 = vadd.xlane.f32.xlu1 %v471_v21  ;;  %469 = vadd.xlane.f32.xlu0 %v468_v24  ;;  %v483_v36 = vsel %vm368_vm8, %v465_v34, 0.0  ;;  %v480_v47 = vsel %vm368_vm8, %v464_v35, 0.0  ;;  %v366_v53 = vmul.f32 %v348_v29, %v268_v49  ;;  %v390_v54 = vsel %vm368_vm8, %v367_v52, 0.0 }
 0x178   : > { %v467_v56 = vmul.f32 %v452_v7, %v269_v48  ;;  %v466_v57 = vmul.f32 %v452_v7, %v268_v49 }
 0x179   : > { %v387_v55 = vsel %vm368_vm8, %v366_v53, 0.0 }
 0x17a   : > { %v489_v58 = vsel %vm368_vm8, %v467_v56, 0.0  ;;  %v486_v59 = vsel %vm368_vm8, %v466_v57, 0.0 }
 0x17b   : > { %478 = vadd.xlane.f32.xlu1 %v477_v32  ;;  %475 = vadd.xlane.f32.xlu0 %v474_v33 }
 0x17f   : > { %484 = vadd.xlane.f32.xlu1 %v483_v36  ;;  %481 = vadd.xlane.f32.xlu0 %v480_v47 }
 0x183   : > { %373 = vadd.xlane.f32.xlu1 %v372_v39  ;;  %370 = vadd.xlane.f32.xlu0 %v369_v40 }
 0x187   : > { %379 = vadd.xlane.f32.xlu1 %v378_v44  ;;  %376 = vadd.xlane.f32.xlu0 %v375_v41 }
 0x18b   : > { %385 = vadd.xlane.f32.xlu1 %v384_v50  ;;  %382 = vadd.xlane.f32.xlu0 %v381_v51 }
 0x18f   : > { %391 = vadd.xlane.f32.xlu1 %v390_v54  ;;  %388 = vadd.xlane.f32.xlu0 %v387_v55 }
 0x193   : > { %490 = vadd.xlane.f32.xlu1 %v489_v58  ;;  %487 = vadd.xlane.f32.xlu0 %v486_v59 }
 0x200   : > { %v473_v60 = vpop.xlane.xlu1 %472  ;;  %v470_v61 = vpop.xlane.xlu0 %469 }
 0x204   : > { %v479_v62 = vpop.xlane.xlu1 %478  ;;  %v476_v63 = vpop.xlane.xlu0 %475 }
 0x208   : > { %v485_v3 = vpop.xlane.xlu1 %484  ;;  %v482_v10 = vpop.xlane.xlu0 %481 }
 0x20c   : > { %v374_v11 = vpop.xlane.xlu1 %373  ;;  %v371_v12 = vpop.xlane.xlu0 %370 }
 0x20d   : > { %v493_v13 = vadd.f32 %v473_v60, %v374_v11  ;;  %v492_v16 = vadd.f32 %v470_v61, %v371_v12 }
 0x20f   : > { %v677_v17 = vmul.f32 -1.442695, %v493_v13  ;;  %v676_v7 = vmul.f32 -1.442695, %v492_v16 }
 0x210   : > { %v380_v20 = vpop.xlane.xlu1 %379  ;;  %v377_v21 = vpop.xlane.xlu0 %376 }
 0x211   : > { %741 = vpow2.f32 %v677_v17  ;;  %v495_v24 = vadd.f32 %v479_v62, %v380_v20  ;;  %v494_v25 = vadd.f32 %v476_v63, %v377_v21 }
 0x212   : > { %743 = vpow2.f32 %v676_v7 }
 0x213   : > { %v679_v28 = vmul.f32 -1.442695, %v495_v24  ;;  %v678_v29 = vmul.f32 -1.442695, %v494_v25 }
 0x214   : > { %v386_v30 = vpop.xlane.xlu1 %385  ;;  %v383_v31 = vpop.xlane.xlu0 %382 }
 0x215   : > { %745 = vpow2.f32 %v679_v28  ;;  %v497_v32 = vadd.f32 %v485_v3, %v386_v30  ;;  %v496_v33 = vadd.f32 %v482_v10, %v383_v31 }
 0x216   : > { %747 = vpow2.f32 %v678_v29 }
 0x217   : > { %v681_v34 = vmul.f32 -1.442695, %v497_v32  ;;  %v680_v35 = vmul.f32 -1.442695, %v496_v33 }
 0x218   : > { %v392_v36 = vpop.xlane.xlu1 %391  ;;  %v389_v47 = vpop.xlane.xlu0 %388 }
 0x219   : > { %749 = vpow2.f32 %v681_v34 }
 0x21a   : > { %751 = vpow2.f32 %v680_v35 }
 0x21c   : > { %v491_v37 = vpop.xlane.xlu1 %490  ;;  %v488_v38 = vpop.xlane.xlu0 %487 }
 0x21d   : > { %v499_v39 = vadd.f32 %v491_v37, %v392_v36  ;;  %v498_v40 = vadd.f32 %v488_v38, %v389_v47 }
 0x21e   : > { %v742_v42 = vpop.eup %741 }
 0x21f   : > { %v744_v43 = vpop.eup %743  ;;  %v525_v44 = vadd.f32 1.0, %v742_v42  ;;  %v683_v41 = vmul.f32 -1.442695, %v499_v39  ;;  %v682_v46 = vmul.f32 -1.442695, %v498_v40 }
 0x220   : > { %v524_v45 = vadd.f32 1.0, %v744_v43 }
 0x221   : > { %753 = vrcp.f32 %v525_v44 }
 0x222   : > { %v746_v48 = vpop.eup %745  ;;  %755 = vrcp.f32 %v524_v45 }
 0x223   : > { %v748_v49 = vpop.eup %747  ;;  %v527_v50 = vadd.f32 1.0, %v746_v48  ;;  %757 = vpow2.f32 %v683_v41 }
 0x224   : > { %v526_v51 = vadd.f32 1.0, %v748_v49  ;;  %759 = vpow2.f32 %v682_v46 }
 0x225   : > { %761 = vrcp.f32 %v527_v50 }
 0x226   : > { %v750_v52 = vpop.eup %749  ;;  %763 = vrcp.f32 %v526_v51 }
 0x227   : > { %v752_v53 = vpop.eup %751  ;;  %v529_v54 = vadd.f32 1.0, %v750_v52 }
 0x228   : > { %v528_v55 = vadd.f32 1.0, %v752_v53 }
 0x229   : > { %765 = vrcp.f32 %v529_v54 }
 0x22a   : > { %767 = vrcp.f32 %v528_v55 }
 0x22e   : > { %v754_v56 = vpop.eup %753 }
 0x22f   : > { %v756_v57 = vpop.eup %755  ;;  %v550_v58 = vmul.f32 %v754_v56, %v1025_v8  ;;  %v551_v59 = vmul.f32 %v754_v56, %v1028_v9 }
 0x230   : > { %v758_v60 = vpop.eup %757  ;;  %v548_v61 = vmul.f32 %v756_v57, %v1009_v2  ;;  %v549_v62 = vmul.f32 %v756_v57, %v1014_v4 }
 0x231   : > { %v760_v63 = vpop.eup %759  ;;  %566 = vst [vmem:[%s1151_s6 + $0x10] sm:$0xff] %v550_v58  ;;  %567 = vst [vmem:[%s1151_s6 + $0x18] sm:$0xff] %v551_v59  ;;  %v531_v8 = vadd.f32 1.0, %v758_v60 }
 0x232   : > { %v762_v9 = vpop.eup %761  ;;  %564 = vst [vmem:[%s1151_s6] sm:$0xff] %v548_v61  ;;  %565 = vst [vmem:[%s1151_s6 + $0x8] sm:$0xff] %v549_v62  ;;  %v530_v2 = vadd.f32 1.0, %v760_v63 }
 0x233   : > { %v764_v4 = vpop.eup %763  ;;  %v554_v3 = vmul.f32 %v762_v9, %v1017_v5  ;;  %v555_v10 = vmul.f32 %v762_v9, %v1020_v6  ;;  %769 = vrcp.f32 %v531_v8 }
 0x234   : > { %v552_v11 = vmul.f32 %v764_v4, %v1003_v0  ;;  %v553_v12 = vmul.f32 %v764_v4, %v1006_v1  ;;  %771 = vrcp.f32 %v530_v2 }
 0x235   : > { %570 = vst [vmem:[%s1151_s6 + $0x30] sm:$0xff] %v554_v3  ;;  %571 = vst [vmem:[%s1151_s6 + $0x38] sm:$0xff] %v555_v10 }
 0x236   : > { %v766_v13 = vpop.eup %765  ;;  %568 = vst [vmem:[%s1151_s6 + $0x20] sm:$0xff] %v552_v11  ;;  %569 = vst [vmem:[%s1151_s6 + $0x28] sm:$0xff] %v553_v12 }
 0x237   : > { %v768_v5 = vpop.eup %767  ;;  %v558_v16 = vmul.f32 %v766_v13, %v1049_v18  ;;  %v559_v6 = vmul.f32 %v766_v13, %v1052_v19 }
 0x238   : > { %v556_v17 = vmul.f32 %v768_v5, %v1039_v14  ;;  %v557_v0 = vmul.f32 %v768_v5, %v1042_v15 }
 0x239   : > { %574 = vst [vmem:[%s1151_s6 + $0x50] sm:$0xff] %v558_v16  ;;  %575 = vst [vmem:[%s1151_s6 + $0x58] sm:$0xff] %v559_v6 }
 0x23a   : > { %572 = vst [vmem:[%s1151_s6 + $0x40] sm:$0xff] %v556_v17  ;;  %573 = vst [vmem:[%s1151_s6 + $0x48] sm:$0xff] %v557_v0 }
 0x240   : > { %v770_v1 = vpop.eup %769 }
 0x241   : > { %v772_v18 = vpop.eup %771  ;;  %v562_v19 = vmul.f32 %v770_v1, %v1069_v26  ;;  %v563_v14 = vmul.f32 %v770_v1, %v1072_v27 }
 0x242   : > { %v560_v15 = vmul.f32 %v772_v18, %v1059_v22  ;;  %v561_v7 = vmul.f32 %v772_v18, %v1062_v23 }
 0x243   : > { %578 = vst [vmem:[%s1151_s6 + $0x70] sm:$0xff] %v562_v19  ;;  %579 = vst [vmem:[%s1151_s6 + $0x78] sm:$0xff] %v563_v14 }
 0x244   : > { %576 = vst [vmem:[%s1151_s6 + $0x60] sm:$0xff] %v560_v15  ;;  %577 = vst [vmem:[%s1151_s6 + $0x68] sm:$0xff] %v561_v7 }
 0x245   : > { %814 = shalt.err (!%p811_p10)
}
 0x246   : > { %s815_s28 = scalar_lea.hbm %s1180_s19, 2048  ;;  %s819_s10 = scalar_lea.hbm %s1234_s3, 4096 }
 0x247   : > { %p816_p0 = scmp.ne.s32.totalorder %s1180_s19, %s815_s28  ;;  %p820_p1 = scmp.lt.s32.totalorder %s1180_s19, %s1234_s3 }
 0x248   : > { %p821_p3 = scmp.lt.s32.totalorder %s819_s10, %s815_s28 }
 0x249   : > { %p817_p2 = pnand %p816_p0, %p1243_p12 }
 0x24a   : > { %p822_p6 = por %p821_p3, %p820_p1 }
 0x24b   : > { %p818_p9 = pneg %p817_p2 }
 0x24d   : > { %p823_p11 = pnand %p822_p6, %p818_p9 }
 0x24f   : > { %826 = shalt.err (!%p823_p11)
}
 0x250   : > { %s871_s4 = smov 256   ;;  %s872_s6 = smov 16  }
 0x251   : > { %693 = dma.vmem_to_hbm [thread:$0]  (%p1243_p12), %s1182_s7, 2048, %s1180_s19, %s581_s16, %s871_s4, %s871_s4, %s872_s6  }
 0x252 PF: > { %s609_s9 = sand.u32 1, %s853_s12   ;;  %p1244_p13 = scmp.ne.s32.totalorder %s1240_s25, 0 }
 0x253   : > { %p1245_p4 = scmp.ge.s32.totalorder %s865_s15, 2  ;;  %s610_s8 = scalar_lea.sflag [#allocation4], %s609_s9 }
 0x255   : > { %p700_p5 = pnand %p1245_p4, %p1244_p13 }
 0x257   : > { %p701_p7 = pneg %p700_p5 }
 0x259   : > { %848 = dma.done.wait (%p701_p7), %s610_s8, 2048  }
 0x25a   : > { %850 = vsyncadd (%p701_p7), %s610_s8, 4294965248  ;;  %p16_p8 = scmp.ge.s32.totalorder %s918_s18, 4   ;;  %s1246_s12 = smov %s857_s13 }
 0x25b   : > { %s1247_s13 = smov %s861_s14  ;;  %s1248_s14 = smov %s930_s21 }
 0x25c   : > { %s1249_s15 = smov %s918_s18  ;;  %18 = sbr.rel (!%p16_p8) target bundleno = 5 (0x5), region = 77 }
 0x261   :  { %615 = vsyncpa [#allocation3], 1 }
 0x262   :  { %617 = vsyncpa [#allocation3 + $0x1], 1 }
 0x263   :  { %618 = vsyncpa [#allocation4], 1 }
 0x264   :  { %620 = vsyncpa [#allocation4 + $0x1], 1 }

</bundles_post_ra>
